<compile_context>
chip_gen: v5e
topology: v5e:2x2
jax: 0.10.0
libtpu: 0.0.40
codegen_flags: <defaults>
</compile_context>

<pallas_src>
import functools

import jax
import jax.numpy as jnp
import numpy as np
from jax.experimental import pallas as pl
from jax.experimental.pallas import tpu as pltpu


def _round_up(x, mult):
    return ((x + mult - 1) // mult) * mult


def _angular_penalty_kernel(labels_ref, x_ref, w_ref, out_ref,
                            xn_ref, tgt_ref, sume_ref, *,
                            loss_type, s, m, eps, num_classes, tc):
    kc = pl.program_id(1)

    @pl.when(kc == 0)
    def _init():
        x = x_ref[...]                                            # (TM, Dp) f32
        sumsq = jnp.sum(x * x, axis=1, keepdims=True)             # (TM, 1)
        # torch F.normalize: x / max(||x||, 1e-12)  (rsqrt -> EUP slot, no divide)
        inv_norm = jax.lax.rsqrt(jnp.maximum(sumsq, 1e-24))
        xn_ref[...] = (x * inv_norm).astype(xn_ref.dtype)
        tgt_ref[...] = jnp.zeros_like(tgt_ref)
        sume_ref[...] = jnp.zeros_like(sume_ref)

    # (TM, Dp) @ (Dp, TC) on the MXU, f32 accumulation.
    wf = jnp.dot(xn_ref[...], w_ref[...], preferred_element_type=jnp.float32)

    labels = labels_ref[...]                                      # (TM, 1) int32
    class_ids = jax.lax.broadcasted_iota(jnp.int32, wf.shape, 1) + kc * tc
    is_target = class_ids == labels                               # (TM, TC) bool
    is_valid = class_ids < num_classes                            # mask class padding

    # Target logit: exactly one class tile contains each row's label.
    tgt_ref[...] += jnp.sum(jnp.where(is_target, wf, 0.0), axis=1, keepdims=True)
    # Target-exclusive sum of exp(s * wf) (matches the reference's `excl` construction).
    exp_swf = jnp.exp(s * wf)
    sume_ref[...] += jnp.sum(
        jnp.where(is_valid & (~is_target), exp_swf, 0.0), axis=1, keepdims=True)

    @pl.when(kc == pl.num_programs(1) - 1)
    def _finalize():
        t = tgt_ref[...]                                          # (TM, 1)
        if loss_type == "cosface":
            numerator = s * (t - m)
        elif loss_type == "arcface":
            # s * cos(acos(clamp(t)) + m) == s * (t*cos(m) - sqrt(1-t^2)*sin(m))
            tcl = jnp.clip(t, -1.0 + eps, 1.0 - eps)
            numerator = s * (tcl * np.cos(m) - jnp.sqrt(1.0 - tcl * tcl) * np.sin(m))
        else:  # sphereface
            # TODO(synk): relies on jnp.arccos lowering in Mosaic; untested path.
            tcl = jnp.clip(t, -1.0 + eps, 1.0 - eps)
            numerator = s * jnp.cos(m * jnp.arccos(tcl))
        denominator = jnp.exp(numerator) + sume_ref[...]
        out_ref[...] = numerator - jnp.log(denominator)           # per-row L


def angular_penalty_sm_loss(x, weight, labels, *, loss_type="cosface", eps=1e-7,
                            s=None, m=None, block_rows=256, block_classes=512,
                            matmul_dtype=jnp.float32):
    loss_type = loss_type.lower()
    assert loss_type in ("arcface", "sphereface", "cosface")
    if loss_type == "arcface":
        s = 64.0 if not s else s
        m = 0.5 if not m else m
    if loss_type == "sphereface":
        s = 64.0 if not s else s
        m = 1.35 if not m else m
    if loss_type == "cosface":
        s = 32.0 if not s else s
        m = 0.2 if not m else m

    n, d = x.shape
    c = weight.shape[0]
    assert weight.shape == (c, d)

    # Tile / pad sizes: lanes (last dim) to multiples of 128, f32 sublanes to 8.
    d_pad = _round_up(d, 128)
    tm = min(int(block_rows), _round_up(n, 8))
    tc = min(int(block_classes), _round_up(c, 128))
    n_pad = _round_up(n, tm)
    c_pad = _round_up(c, tc)

    x_p = jnp.zeros((n_pad, d_pad), jnp.float32).at[:n, :d].set(x.astype(jnp.float32))
    # Pre-transposed weight -> canonical (K=D, N=C) RHS for the MXU.
    w_t = jnp.zeros((d_pad, c_pad), matmul_dtype).at[:d, :c].set(
        weight.T.astype(matmul_dtype))
    labels_p = jnp.zeros((n_pad, 1), jnp.int32).at[:n, 0].set(labels.astype(jnp.int32))

    grid = (n_pad // tm, c_pad // tc)

    # Explicit scoped-VMEM budget with headroom (double-buffered inputs + scratch),
    # clamped so it stays safe on v7x's smaller physical VMEM.
    mm_bytes = np.dtype(matmul_dtype).itemsize
    est = (2 * tm * d_pad * 4            # x tile (double-buffered)
           + 2 * d_pad * tc * mm_bytes   # W^T class tiles (double-buffered)
           + tm * d_pad * mm_bytes       # normalized-x scratch
           + 2 * tm * tc * 4             # wf / exp temporaries
           + 4 * tm * 128 * 4)           # labels / out / per-row accumulators (padded)
    vmem_limit = int(min(max(2 * est, 8 << 20), 48 << 20))

    kernel = functools.partial(
        _angular_penalty_kernel,
        loss_type=loss_type, s=float(s), m=float(m), eps=float(eps),
        num_classes=c, tc=tc)

    per_row = pl.pallas_call(
        kernel,
        out_shape=jax.ShapeDtypeStruct((n_pad, 1), jnp.float32),
        grid_spec=pltpu.PrefetchScalarGridSpec(
            num_scalar_prefetch=0,
            grid=grid,
            in_specs=[
                pl.BlockSpec((tm, 1), lambda i, kc: (i, 0)),        # labels (row tile)
                pl.BlockSpec((tm, d_pad), lambda i, kc: (i, 0)),    # x (row tile)
                pl.BlockSpec((d_pad, tc), lambda i, kc: (0, kc)),   # W^T (class tile)
            ],
            out_specs=pl.BlockSpec((tm, 1), lambda i, kc: (i, 0)),  # per-row losses
            scratch_shapes=[
                pltpu.VMEM((tm, d_pad), matmul_dtype),   # normalized x cache
                pltpu.VMEM((tm, 1), jnp.float32),        # target-logit accumulator
                pltpu.VMEM((tm, 1), jnp.float32),        # sum_{j!=y} exp(s*wf) accum
            ]),
        compiler_params=pltpu.CompilerParams(
            dimension_semantics=("parallel", "arbitrary"),
            vmem_limit_bytes=vmem_limit),
    )(labels_p, x_p, w_t)

    # loss = -mean over the real (unpadded) rows.
    return -jnp.sum(per_row[:n, 0]) / n


def _reference_loss(x, weight, labels, *, s=32.0, m=0.2):
    # Pure-JAX port of the PyTorch cosface path (correctness check only).
    norm = jnp.sqrt(jnp.sum(x * x, axis=1, keepdims=True))
    x_n = x / jnp.maximum(norm, 1e-12)
    wf = x_n @ weight.T
    target = wf[jnp.arange(x.shape[0]), labels]
    numerator = s * (target - m)
    onehot = jax.nn.one_hot(labels, wf.shape[1], dtype=jnp.bool_)
    excl_sum = jnp.sum(jnp.where(onehot, 0.0, jnp.exp(s * wf)), axis=1)
    denominator = jnp.exp(numerator) + excl_sum
    L = numerator - jnp.log(denominator)
    return -jnp.mean(L)


if __name__ == "__main__":
    # Small shapes that still exercise the grid: with block_rows=8 / block_classes=128
    # this becomes 3 row tiles x 2 class tiles after padding (D padded 40 -> 128,
    # C padded 150 -> 256, N padded 24 -> 24).
    N, in_features, out_features = 24, 40, 150

    key = jax.random.PRNGKey(0)
    kx, kw, kl = jax.random.split(key, 3)

    x = jax.random.normal(kx, (N, in_features), dtype=jnp.float32)
    # nn.Linear default init: U(-1/sqrt(in), 1/sqrt(in)), weight shape (out, in).
    bound = 1.0 / np.sqrt(in_features)
    weight = jax.random.uniform(kw, (out_features, in_features), dtype=jnp.float32,
                                minval=-bound, maxval=bound)
    labels = jax.random.randint(kl, (N,), 0, out_features, dtype=jnp.int32)

    loss = angular_penalty_sm_loss(x, weight, labels, loss_type="cosface",
                                   block_rows=8, block_classes=128)
    loss = jax.block_until_ready(loss)

    ref = _reference_loss(x, weight, labels)
    np.testing.assert_allclose(np.asarray(loss), np.asarray(ref),
                               rtol=5e-5, atol=5e-5)
    print("KERNEL_OK")
</pallas_src>

<mosaic_0001>
module attributes {stable_mosaic.version = 11 : i64} {
  func.func @_angular_penalty_kernel(%arg0: i32, %arg1: i32, %arg2: memref<8x1xi32, #tpu.memory_space<vmem>>, %arg3: memref<8x128xf32, #tpu.memory_space<vmem>>, %arg4: memref<128x128xf32, #tpu.memory_space<vmem>>, %arg5: memref<8x1xf32, #tpu.memory_space<vmem>>, %arg6: memref<8x128xf32, #tpu.memory_space<vmem>>, %arg7: memref<8x1xf32, #tpu.memory_space<vmem>>, %arg8: memref<8x1xf32, #tpu.memory_space<vmem>>) attributes {dimension_semantics = [#tpu.dimension_semantics<parallel>, #tpu.dimension_semantics<arbitrary>], iteration_bounds = array<i64: 3, 2>, scalar_prefetch = 0 : i64, scratch_operands = 3 : i64, tpu.core_type = #tpu.core_type<tc>, window_params = [{transform_indices = @transform_0, window_bounds = array<i64: 8, 1>}, {transform_indices = @transform_1, window_bounds = array<i64: 8, 128>}, {transform_indices = @transform_2, window_bounds = array<i64: 128, 128>}, {transform_indices = @transform_3, window_bounds = array<i64: 8, 1>}]} {
    %c0_i32 = arith.constant 0 : i32
    %0 = arith.cmpi eq, %arg1, %c0_i32 : i32
    %1 = arith.extui %0 : i1 to i32
    %c0_i32_0 = arith.constant 0 : i32
    %2 = arith.cmpi ne, %1, %c0_i32_0 : i32
    scf.if %2 {
      %c0_21 = arith.constant 0 : index
      %c0_22 = arith.constant 0 : index
      %37 = vector.load %arg3[%c0_21, %c0_22] : memref<8x128xf32, #tpu.memory_space<vmem>>, vector<8x128xf32>
      %38 = arith.mulf %37, %37 : vector<8x128xf32>
      %cst_23 = arith.constant dense<0.000000e+00> : vector<8xf32>
      %39 = vector.multi_reduction <add>, %38, %cst_23 [1] : vector<8x128xf32> to vector<8xf32>
      %40 = vector.shape_cast %39 : vector<8xf32> to vector<8x1xf32>
      %cst_24 = arith.constant 1.000000e-24 : f32
      %41 = vector.broadcast %cst_24 : f32 to vector<8x1xf32>
      %42 = arith.maximumf %40, %41 : vector<8x1xf32>
      %43 = math.rsqrt %42 : vector<8x1xf32>
      %44 = vector.broadcast %43 : vector<8x1xf32> to vector<8x128xf32>
      %45 = arith.mulf %37, %44 : vector<8x128xf32>
      %c0_25 = arith.constant 0 : index
      %c0_26 = arith.constant 0 : index
      %46 = vector.load %arg6[%c0_25, %c0_26] : memref<8x128xf32, #tpu.memory_space<vmem>>, vector<8x128xf32>
      tpu.vector_store %arg6[%c0_25, %c0_26], %45 {strides = array<i32>} : memref<8x128xf32, #tpu.memory_space<vmem>>, vector<8x128xf32>,
      %cst_27 = arith.constant 0.000000e+00 : f32
      %47 = vector.broadcast %cst_27 : f32 to vector<8x1xf32>
      %c0_28 = arith.constant 0 : index
      %c0_29 = arith.constant 0 : index
      %48 = vector.load %arg7[%c0_28, %c0_29] : memref<8x1xf32, #tpu.memory_space<vmem>>, vector<8x1xf32>
      tpu.vector_store %arg7[%c0_28, %c0_29], %47 {strides = array<i32>} : memref<8x1xf32, #tpu.memory_space<vmem>>, vector<8x1xf32>,
      %cst_30 = arith.constant 0.000000e+00 : f32
      %49 = vector.broadcast %cst_30 : f32 to vector<8x1xf32>
      %c0_31 = arith.constant 0 : index
      %c0_32 = arith.constant 0 : index
      %50 = vector.load %arg8[%c0_31, %c0_32] : memref<8x1xf32, #tpu.memory_space<vmem>>, vector<8x1xf32>
      tpu.vector_store %arg8[%c0_31, %c0_32], %49 {strides = array<i32>} : memref<8x1xf32, #tpu.memory_space<vmem>>, vector<8x1xf32>,
    } else {
    }
    %c0 = arith.constant 0 : index
    %c0_1 = arith.constant 0 : index
    %3 = vector.load %arg6[%c0, %c0_1] : memref<8x128xf32, #tpu.memory_space<vmem>>, vector<8x128xf32>
    %c0_2 = arith.constant 0 : index
    %c0_3 = arith.constant 0 : index
    %4 = vector.load %arg4[%c0_2, %c0_3] : memref<128x128xf32, #tpu.memory_space<vmem>>, vector<128x128xf32>
    %cst = arith.constant dense<0.000000e+00> : vector<8x128xf32>
    %5 = tpu.matmul %3, %4, %cst {dimension_numbers = #tpu.dot_dimension_numbers<[1], [0], [0], [1], [0, 0, 1, 1], [], []>} : vector<8x128xf32>, vector<128x128xf32>, vector<8x128xf32> -> vector<8x128xf32>
    %c0_4 = arith.constant 0 : index
    %c0_5 = arith.constant 0 : index
    %6 = vector.load %arg2[%c0_4, %c0_5] : memref<8x1xi32, #tpu.memory_space<vmem>>, vector<8x1xi32>
    %7 = tpu.iota {dimensions = array<i32: 1>} : vector<8x128xi32>
    %c128_i32 = arith.constant 128 : i32
    %8 = arith.muli %arg1, %c128_i32 : i32
    %9 = vector.broadcast %8 : i32 to vector<8x128xi32>
    %10 = arith.addi %7, %9 : vector<8x128xi32>
    %11 = vector.broadcast %6 : vector<8x1xi32> to vector<8x128xi32>
    %12 = arith.cmpi eq, %10, %11 : vector<8x128xi32>
    %c150_i32 = arith.constant 150 : i32
    %13 = vector.broadcast %c150_i32 : i32 to vector<8x128xi32>
    %14 = arith.cmpi slt, %10, %13 : vector<8x128xi32>
    %c0_6 = arith.constant 0 : index
    %c0_7 = arith.constant 0 : index
    %15 = vector.load %arg7[%c0_6, %c0_7] : memref<8x1xf32, #tpu.memory_space<vmem>>, vector<8x1xf32>
    %cst_8 = arith.constant 0.000000e+00 : f32
    %16 = vector.broadcast %cst_8 : f32 to vector<8x128xf32>
    %17 = arith.select %12, %5, %16 : vector<8x128xi1>, vector<8x128xf32>
    %cst_9 = arith.constant dense<0.000000e+00> : vector<8xf32>
    %18 = vector.multi_reduction <add>, %17, %cst_9 [1] : vector<8x128xf32> to vector<8xf32>
    %19 = vector.shape_cast %18 : vector<8xf32> to vector<8x1xf32>
    %20 = arith.addf %15, %19 : vector<8x1xf32>
    %c0_10 = arith.constant 0 : index
    %c0_11 = arith.constant 0 : index
    %21 = vector.load %arg7[%c0_10, %c0_11] : memref<8x1xf32, #tpu.memory_space<vmem>>, vector<8x1xf32>
    tpu.vector_store %arg7[%c0_10, %c0_11], %20 {strides = array<i32>} : memref<8x1xf32, #tpu.memory_space<vmem>>, vector<8x1xf32>,
    %cst_12 = arith.constant 3.200000e+01 : f32
    %22 = vector.broadcast %cst_12 : f32 to vector<8x128xf32>
    %23 = arith.mulf %22, %5 : vector<8x128xf32>
    %24 = math.exp %23 : vector<8x128xf32>
    %c0_13 = arith.constant 0 : index
    %c0_14 = arith.constant 0 : index
    %25 = vector.load %arg8[%c0_13, %c0_14] : memref<8x1xf32, #tpu.memory_space<vmem>>, vector<8x1xf32>
    %cst_15 = arith.constant dense<true> : vector<8x128xi1>
    %26 = arith.xori %12, %cst_15 : vector<8x128xi1>
    %27 = arith.andi %14, %26 : vector<8x128xi1>
    %cst_16 = arith.constant 0.000000e+00 : f32
    %28 = vector.broadcast %cst_16 : f32 to vector<8x128xf32>
    %29 = arith.select %27, %24, %28 : vector<8x128xi1>, vector<8x128xf32>
    %cst_17 = arith.constant dense<0.000000e+00> : vector<8xf32>
    %30 = vector.multi_reduction <add>, %29, %cst_17 [1] : vector<8x128xf32> to vector<8xf32>
    %31 = vector.shape_cast %30 : vector<8xf32> to vector<8x1xf32>
    %32 = arith.addf %25, %31 : vector<8x1xf32>
    %c0_18 = arith.constant 0 : index
    %c0_19 = arith.constant 0 : index
    %33 = vector.load %arg8[%c0_18, %c0_19] : memref<8x1xf32, #tpu.memory_space<vmem>>, vector<8x1xf32>
    tpu.vector_store %arg8[%c0_18, %c0_19], %32 {strides = array<i32>} : memref<8x1xf32, #tpu.memory_space<vmem>>, vector<8x1xf32>,
    %c1_i32 = arith.constant 1 : i32
    %34 = arith.cmpi eq, %arg1, %c1_i32 : i32
    %35 = arith.extui %34 : i1 to i32
    %c0_i32_20 = arith.constant 0 : i32
    %36 = arith.cmpi ne, %35, %c0_i32_20 : i32
    scf.if %36 {
      %c0_21 = arith.constant 0 : index
      %c0_22 = arith.constant 0 : index
      %37 = vector.load %arg7[%c0_21, %c0_22] : memref<8x1xf32, #tpu.memory_space<vmem>>, vector<8x1xf32>
      %cst_23 = arith.constant 2.000000e-01 : f32
      %38 = vector.broadcast %cst_23 : f32 to vector<8x1xf32>
      %39 = arith.subf %37, %38 : vector<8x1xf32>
      %cst_24 = arith.constant 3.200000e+01 : f32
      %40 = vector.broadcast %cst_24 : f32 to vector<8x1xf32>
      %41 = arith.mulf %40, %39 : vector<8x1xf32>
      %42 = math.exp %41 : vector<8x1xf32>
      %c0_25 = arith.constant 0 : index
      %c0_26 = arith.constant 0 : index
      %43 = vector.load %arg8[%c0_25, %c0_26] : memref<8x1xf32, #tpu.memory_space<vmem>>, vector<8x1xf32>
      %44 = arith.addf %42, %43 : vector<8x1xf32>
      %45 = math.log %44 : vector<8x1xf32>
      %46 = arith.subf %41, %45 : vector<8x1xf32>
      %c0_27 = arith.constant 0 : index
      %c0_28 = arith.constant 0 : index
      %47 = vector.load %arg5[%c0_27, %c0_28] : memref<8x1xf32, #tpu.memory_space<vmem>>, vector<8x1xf32>
      tpu.vector_store %arg5[%c0_27, %c0_28], %46 {strides = array<i32>} : memref<8x1xf32, #tpu.memory_space<vmem>>, vector<8x1xf32>,
    } else {
    }
    return
  }
  func.func @transform_0(%arg0: i32, %arg1: i32) -> (i32, i32) {
    %c0_i32 = arith.constant 0 : i32
    %c0_i32_0 = arith.constant 0 : i32
    return %arg0, %c0_i32 : i32, i32
  }
  func.func @transform_1(%arg0: i32, %arg1: i32) -> (i32, i32) {
    %c0_i32 = arith.constant 0 : i32
    %c0_i32_0 = arith.constant 0 : i32
    return %arg0, %c0_i32 : i32, i32
  }
  func.func @transform_2(%arg0: i32, %arg1: i32) -> (i32, i32) {
    %c0_i32 = arith.constant 0 : i32
    %c0_i32_0 = arith.constant 0 : i32
    return %c0_i32, %arg1 : i32, i32
  }
  func.func @transform_3(%arg0: i32, %arg1: i32) -> (i32, i32) {
    %c0_i32 = arith.constant 0 : i32
    %c0_i32_0 = arith.constant 0 : i32
    return %arg0, %c0_i32 : i32, i32
  }
}

</mosaic_0001>

<bundles_post_ra>
// kernel: tpu_custom_call.1
= control target key start
LH: loop header
LB: loop body
LE: loop exit
PB: predicated region body
PF: predicated region fallthrough
CT: control target
= control target key end

     0   :  { %8 = vsyncpa [#allocation6], 0  ;;  %s821_s0 = inlined_call_operand.vmem [shape: s32[24,1], index: 0, kind: input, shape index: {}]   ;;  %s822_s1 = inlined_call_operand.vmem [shape: f32[24,128], index: 1, kind: input, shape index: {}]   ;;  %s823_s2 = inlined_call_operand.hbm [shape: f32[128,256], index: 2, kind: input, shape index: {}]   ;;  %s824_s3 = inlined_call_operand.vmem [shape: f32[24,1], index: 3, kind: output, shape index: {}]  }
   0x1   :  { %10 = vsyncpa [#allocation6 + $0x1], 0  ;;  %s668_s12 = smov 0   ;;  %s670_s13 = smov 0  }
   0x2   :  { %s672_s14 = smov 0   ;;  %s674_s15 = smov 0  }
   0x3   :  { %s676_s16 = smov 0   ;;  %s678_s17 = smov 0  }
   0x4   :  { %s680_s18 = smov 0   ;;  %s682_s19 = smov 0  }
   0x5 LB: > { %s441_s20 = sadd.s32 4294967295, %s640_s19   ;;  %s25_s21 = sadd.s32 1, %s632_s17  ;;  %s640_s19 = sphi %s682_s19, %s16_s19   ;;  %s636_s18 = sphi %s680_s18, %s833_s18   ;;  %s632_s17 = sphi %s678_s17, %s832_s17   ;;  %s628_s16 = sphi %s676_s16, %s831_s16   ;;  %s624_s15 = sphi %s674_s15, %s830_s15   ;;  %s620_s14 = sphi %s672_s14, %s829_s14   ;;  %s616_s13 = sphi %s670_s13, %s828_s13   ;;  %s612_s12 = sphi %s668_s12, %s827_s12  }
   0x6   : > { %p26_p0 = scmp.ge.s32.totalorder %s25_s21, 2  ;;  %s28_s22 = sadd.s32 1, %s636_s18 }
   0x7   : > { %s87_s23 = sadd.s32 1, %s620_s14  ;;  %p94_p1 = scmp.ne.s32.totalorder %s620_s14, %s616_s13 }
   0x8   : > { %s835_s21 = smov (%p26_p0, %s25_s21), 0  ;;  %s837_s22 = smov (!%p26_p0, %s28_s22), %s636_s18 }
   0x9   : > { %s84_s24 = ssub.s32 %s632_s17, %s835_s21  ;;  %p95_p2 = scmp.eq.s32.totalorder %s640_s19, 0 }
   0xa   : > { %p30_p3 = scmp.ge.s32.totalorder %s837_s22, 3  ;;  %p85_p4 = scmp.eq.s32.totalorder %s84_s24, 0 }
   0xb   : > { %p718_p5 = por %p95_p2, %p94_p1  ;;  %p100_p6 = scmp.ne.s32.totalorder %s616_s13, %s612_s12 }
   0xc   : > { %s839_s22 = smov (%p30_p3, %s837_s22), 0  ;;  %p101_p7 = scmp.eq.s32.totalorder %s441_s20, 0 }
   0xd   : > { %s726_s26 = scalar_select %p85_p4, %s620_s14, %s87_s23  }
   0xe   : > { %p464_p8 = scmp.lt.s32.totalorder %s640_s19, 6  ;;  %s164_s27 = sand.u32 1, %s620_s14  }
   0xf   : > { %p730_p9 = por %p101_p7, %p100_p6  ;;  %s445_s29 = sshll.u32 %s164_s27, 7 }
  0x10   : > { %s446_s30 = sshll.u32 %s632_s17, 3  ;;  %s168_s8 = scalar_lea.vmem [#allocation5], %s445_s29 }
  0x11   : > { %s172_s6 = scalar_lea.hbm %s823_s2, %s446_s30  ;;  %s175_s9 = sshll.u32 %s168_s8, 4  ;;  %s176_s9 = int_to_ptr.vmem [resolvable:$true] %s175_s9 }
  0x12   : > { %s173_s7 = sshll.u32 %s172_s6, 4  ;;  %p461_p10 = pnand %p464_p8, %p718_p5  ;;  %s174_s7 = int_to_ptr.hbm [resolvable:$true] %s173_s7 }
  0x13   : > { %p447_p11 = scmp.ge.s32.totalorder %s640_s19, 1  ;;  %s165_s10 = scalar_lea.sflag [#allocation6], %s164_s27 }
  0x14   : > { %s642_s11 = smov 256   ;;  %s643_s12 = smov 128  }
  0x15   : > { %s644_s20 = smov 8   ;;  %p183_p12 = scmp.lt.s32.totalorder %s640_s19, 7 }
  0x16   : > { %463 = dma.hbm_to_vmem [thread:$0]  (!%p461_p10), %s174_s7, 2048, %s176_s9, %s165_s10, %s642_s11, %s643_s12, %s644_s20  }
  0x17   : > { %p184_p13 = pnand %p447_p11, %p183_p12 }
  0x18   : > { %s189_s23 = sand.u32 (!%p184_p13), 1, %s616_s13  }
  0x19   : > { %187 = sbr.rel (%p184_p13) target bundleno = 497 (0x1f1), region = 32  ;;  %s448_s24 = sshll.u32 (!%p184_p13), %s189_s23, 7 }
  0x1a   : > { %s190_s30 = scalar_lea.sflag (!%p184_p13), [#allocation6], %s189_s23  ;;  %s743_s29 = scalar_lea.vmem (!%p184_p13), [#allocation5], %s448_s24 }
  0x1e   : > { %607 = dma.done.wait (%p730_p9), %s190_s30, 2048  }
  0x1f   : > { %609 = vsyncadd (%p730_p9), %s190_s30, 4294965248  ;;  %p224_p0 = scmp.lt.s32.totalorder %s628_s16, 2  ;;  %p452_p1 = scmp.ne.s32.totalorder %s624_s15, 0 }
  0x21   : > { %s841_s16 = smov (!%p224_p0, %s628_s16), 2  ;;  %239 = sbr.rel (%p452_p1) target bundleno = 180 (0xb4), region = 40 }
  0x22   : > { %s751_s25 = sshll.u32 %s841_s16, 3 }
  0x23   : > { %s227_s5 = scalar_lea.vmem %s821_s0, %s751_s25  ;;  %s231_s8 = scalar_lea.vmem %s822_s1, %s751_s25 }
  0x24   : > { %s235_s10 = scalar_lea.vmem %s824_s3, %s751_s25 }
  0x26   : > { %v240_v0 = vld [vmem:[%s231_s8] sm:$0xff]  ;;  %vm257_vm0 = vcmask 7168   ;;  %v645_v2 = vmov 0.0  }
  0x27   : > { %v241_v1 = vmul.f32 %v240_v0, %v240_v0  ;;  %258 = vst.msk [vmem:[#allocation3] sm:$0xff] %vm257_vm0, %v645_v2 }
  0x28   : > { %259 = vst.msk [vmem:[#allocation4] sm:$0xff] %vm257_vm0, %v645_v2 }
  0x29   : > { %242 = vadd.xlane.f32.xlu0 %v241_v1 }
  0x9c   : > { %v243_v3 = vpop.xlane.xlu0 %242 }
  0x9d   : > { %v244_v4 = vmax.f32 %v243_v3, 1e-24 }
  0x9f   : > { %535 = vrsqrt.f32 %v244_v4  ;;  %vm251_vm2 = vweird.f32 %v244_v4 }
  0xa5   : > { %v536_v5 = vpop.eup %535 }
  0xa6   : > { %v246_v6 = vmul.f32 %v536_v5, %v244_v4  ;;  %vm252_vm1 = vweird.f32 %v536_v5 }
  0xa7   : > { %vm253_vm3 = vmor %vm251_vm2, %vm252_vm1 }
  0xa8   : > { %v247_v7 = vmul.f32 %v536_v5, %v246_v6 }
  0xaa   : > { %v248_v8 = vmul.f32 0.5, %v247_v7 }
  0xac   : > { %v249_v9 = vsub.f32 1.5, %v248_v8 }
  0xae   : > { %v250_v10 = vmul.f32 %v536_v5, %v249_v9 }
  0xb0   : > { %v254_v11 = vsel %vm253_vm3, %v536_v5, %v250_v10 }
  0xb1   : > { %v255_v12 = vmul.f32 %v254_v11, %v240_v0 }
  0xb3   : > { %256 = vst [vmem:[#allocation2] sm:$0xff] %v255_v12 }
  0xb4 PF: > { %v276_v13 = vld [vmem:[%s743_s29 + $0x78] sm:$0xff]  ;;  %v275_v14 = vld [vmem:[%s743_s29 + $0x70] sm:$0xff]  ;;  %v646_v15 = vmov 0   ;;  %v274_v16 = vld [vmem:[%s743_s29 + $0x68] sm:$0xff]  ;;  %v298_v32 = vlaneseq  ;;  %s453_s12 = sshll.u32 %s624_s15, 7  ;;  %vm647_vm5 = vmmov 1  }
  0xb5   : > { %277 = vmatpush.msra.mxu0 %v276_v13  ;;  %537 = vset.pattern.permute.xlu0 %v646_v15  ;;  %v273_v17 = vld [vmem:[%s743_s29 + $0x60] sm:$0xff]  ;;  %v297_v18 = vld [vmem:[%s227_s5] sm:$0xff]  ;;  %v272_v19 = vld [vmem:[%s743_s29 + $0x58] sm:$0xff]  ;;  %v301_v34 = vstv %s453_s12  ;;  %vm313_vm9 = vcmask 7168   ;;  %p454_p2 = scmp.ne.s32.totalorder %s624_s15, 1 }
  0xb6   : > { %304 = vperm.xlu0 %537, %v297_v18   ;;  %v271_v20 = vld [vmem:[%s743_s29 + $0x50] sm:$0xff]  ;;  %v270_v21 = vld [vmem:[%s743_s29 + $0x48] sm:$0xff]  ;;  %v269_v22 = vld [vmem:[%s743_s29 + $0x40] sm:$0xff]  ;;  %v299_v33 = vand.u32 127, %v298_v32 }
  0xb7   : > { %278 = vmatpush.msra.mxu0 %v275_v14  ;;  %v268_v23 = vld [vmem:[%s743_s29 + $0x38] sm:$0xff]  ;;  %v267_v24 = vld [vmem:[%s743_s29 + $0x30] sm:$0xff]  ;;  %v266_v25 = vld [vmem:[%s743_s29 + $0x28] sm:$0xff] }
  0xb8   : > { %v265_v26 = vld [vmem:[%s743_s29 + $0x20] sm:$0xff]  ;;  %v264_v27 = vld [vmem:[%s743_s29 + $0x18] sm:$0xff]  ;;  %v263_v28 = vld [vmem:[%s743_s29 + $0x10] sm:$0xff]  ;;  %v302_v35 = vadd.s32 %v301_v34, %v299_v33 }
  0xb9   : > { %279 = vmatpush.msra.mxu0 %v274_v16  ;;  %v262_v29 = vld [vmem:[%s743_s29 + $0x8] sm:$0xff]  ;;  %v261_v30 = vld [vmem:[%s743_s29] sm:$0xff]  ;;  %v308_v43 = vld [vmem:[#allocation3] sm:$0xff] }
  0xba   : > { %v260_v31 = vld [vmem:[#allocation2] sm:$0xff]  ;;  %vm307_vm7 = vcmp.lt.s32.totalorder %v302_v35, 150  ;;  %v318_v46 = vld [vmem:[#allocation4] sm:$0xff] }
  0xbb   : > { %280 = vmatpush.msra.mxu0 %v273_v17 }
  0xbd   : > { %281 = vmatpush.msra.mxu0 %v272_v19 }
  0xbf   : > { %282 = vmatpush.msra.mxu0 %v271_v20 }
  0xc1   : > { %283 = vmatpush.msra.mxu0 %v270_v21 }
  0xc3   : > { %284 = vmatpush.msra.mxu0 %v269_v22 }
  0xc5   : > { %285 = vmatpush.msra.mxu0 %v268_v23 }
  0xc7   : > { %286 = vmatpush.msra.mxu0 %v267_v24 }
  0xc9   : > { %287 = vmatpush.msra.mxu0 %v266_v25 }
  0xcb   : > { %288 = vmatpush.msra.mxu0 %v265_v26 }
  0xcd   : > { %289 = vmatpush.msra.mxu0 %v264_v27 }
  0xcf   : > { %290 = vmatpush.msra.mxu0 %v263_v28 }
  0xd1   : > { %291 = vmatpush.msra.mxu0 %v262_v29 }
  0xd3   : > { %292 = vmatpush.msra.mxu0 %v261_v30 }
  0xd4   : > { %293 = vmatmul.f32.vlgmr.msra.gmra.mxu0 %v260_v31 }
 0x128   : > { %v305_v36 = vpop.permute.xlu0 %304 }
 0x129   : > { %vm306_vm4 = vcmp.eq.s32.totalorder %v302_v35, %v305_v36 }
 0x12a   : > { %vm319_vm6 = vmxor %vm306_vm4, %vm647_vm5 }
 0x12b   : > { %vm320_vm8 = vmand %vm307_vm7, %vm319_vm6 }
 0x151   : > { %v294_v37 = vpop.f32.mrf.mxu0 }
 0x152   : > { %v315_v38 = vmul.f32 32.0, %v294_v37  ;;  %v309_v39 = vsel %vm306_vm4, %v294_v37, 0.0 }
 0x153   : > { %310 = vadd.xlane.f32.xlu0 %v309_v39 }
 0x154   : > { %v316_v40 = vmul.f32 1.442695, %v315_v38 }
 0x156   : > { %538 = vpow2.f32 %v316_v40 }
 0x15c   : > { %v539_v41 = vpop.eup %538 }
 0x15d   : > { %v321_v42 = vsel %vm320_vm8, %v539_v41, 0.0 }
 0x15e   : > { %322 = vadd.xlane.f32.xlu1 %v321_v42 }
 0x1c6   : > { %v311_v44 = vpop.xlane.xlu0 %310 }
 0x1c7   : > { %v312_v45 = vadd.f32 %v311_v44, %v308_v43 }
 0x1c9   : > { %314 = vst.msk [vmem:[#allocation3] sm:$0xff] %vm313_vm9, %v312_v45 }
 0x1d0   : > { %329 = sbr.rel (%p454_p2) target bundleno = 497 (0x1f1), region = 44 }
 0x1d1   : > { %v323_v47 = vpop.xlane.xlu1 %322 }
 0x1d2   : > { %v324_v48 = vadd.f32 %v323_v47, %v318_v46 }
 0x1d4   : > { %325 = vst.msk [vmem:[#allocation4] sm:$0xff] %vm313_vm9, %v324_v48 }
 0x1d5   : > { %v330_v49 = vld [vmem:[#allocation3] sm:$0xff] }
 0x1d6   : > { %v455_v50 = vadd.f32 -0.2, %v330_v49 }
 0x1d8   : > { %v332_v51 = vmul.f32 32.0, %v455_v50 }
 0x1da   : > { %v333_v52 = vmul.f32 1.442695, %v332_v51 }
 0x1db   : > { %v335_v53 = vld [vmem:[#allocation4] sm:$0xff] }
 0x1dc   : > { %540 = vpow2.f32 %v333_v52 }
 0x1e2   : > { %v541_v54 = vpop.eup %540 }
 0x1e3   : > { %v336_v55 = vadd.f32 %v541_v54, %v335_v53 }
 0x1e5   : > { %542 = vlog2.f32 %v336_v55 }
 0x1eb   : > { %v543_v56 = vpop.eup %542 }
 0x1ec   : > { %v338_v57 = vmul.f32 0.6931472, %v543_v56 }
 0x1ee   : > { %v339_v58 = vsub.f32 %v332_v51, %v338_v57 }
 0x1f0   : > { %340 = vst.msk [vmem:[%s235_s10] sm:$0xff] %vm313_vm9, %v339_v58 }
 0x1f1 PF: > { %s16_s19 = sadd.s32 1, %s640_s19   ;;  %s827_s12 = smov %s616_s13 }
 0x1f2   : > { %p13_p3 = scmp.ge.s32.totalorder %s16_s19, 8   ;;  %s828_s13 = smov %s620_s14 }
 0x1f3   : > { %s829_s14 = smov %s726_s26  ;;  %s830_s15 = smov %s632_s17 }
 0x1f4   : > { %s831_s16 = smov %s636_s18  ;;  %s832_s17 = smov %s835_s21 }
 0x1f5   : > { %s833_s18 = smov %s839_s22  ;;  %15 = sbr.rel (!%p13_p3) target bundleno = 5 (0x5), region = 86 }
 0x1fa   :  { %360 = vsyncpa [#allocation6], 1 }
 0x1fb   :  { %362 = vsyncpa [#allocation6 + $0x1], 1 }

</bundles_post_ra>
